<compile_context>
chip_gen: v6e
topology: v6e:2x2x1
jax: 0.10.0
libtpu: 0.0.40
codegen_flags: <defaults>
</compile_context>

<pallas_src>
import functools

import jax
import jax.numpy as jnp
from jax.experimental import pallas as pl
from jax.experimental.pallas import tpu as pltpu

_MIB = 1024 * 1024


def _round_up(a: int, m: int) -> int:
    return ((a + m - 1) // m) * m


def _cdiv(a: int, b: int) -> int:
    return (a + b - 1) // b


def _vmem_capacity_bytes() -> int:
    """Per-core VMEM capacity; conservative fallback = 64 MiB (v7x)."""
    try:
        info = pltpu.get_tpu_info()
        cap = getattr(info, "vmem_capacity_bytes", None)
        if cap:
            return int(cap)
    except Exception:
        pass
    return 64 * _MIB


# --------------------------------------------------------------------------- #
# Kernels
# --------------------------------------------------------------------------- #
def _single_step_kernel(x_ref, w_ref, b_ref, o_ref, *, compute_dtype):
    # x_ref: [tm, nf_p] (input dtype)   w_ref: [nf_p, tw_p] (resident)
    # b_ref: [1, tw_p] f32              o_ref: [tm, tw_p]
    x = x_ref[...]
    if compute_dtype is not None:
        x = x.astype(compute_dtype)          # VPU cast, no extra HBM pass
    y = jnp.dot(x, w_ref[...], preferred_element_type=jnp.float32)
    o_ref[...] = (y + b_ref[...].astype(jnp.float32)).astype(o_ref.dtype)


def _ktiled_kernel(x_ref, w_ref, b_ref, o_ref, acc_ref, *, compute_dtype):
    # x_ref: [tm, tk]   w_ref: [tk, tw_p]   b_ref: [1, tw_p]
    # o_ref: [tm, tw_p] acc_ref: [tm, tw_p] f32 scratch
    k = pl.program_id(1)

    @pl.when(k == 0)
    def _init():
        # Seed the accumulator with the bias (applied exactly once).
        acc_ref[...] = jnp.broadcast_to(
            b_ref[...].astype(jnp.float32), acc_ref.shape
        )

    x = x_ref[...]
    if compute_dtype is not None:
        x = x.astype(compute_dtype)
    acc_ref[...] += jnp.dot(x, w_ref[...], preferred_element_type=jnp.float32)

    @pl.when(k == pl.num_programs(1) - 1)
    def _finalize():
        o_ref[...] = acc_ref[...].astype(o_ref.dtype)


# --------------------------------------------------------------------------- #
# Wrapper
# --------------------------------------------------------------------------- #
def flatten_head(
    x,
    weight,
    bias,
    *,
    tm_target: int = 256,
    tk_target: int = 2048,
    compute_dtype=jnp.bfloat16,
    allow_resident_weight: bool = True,
):
    """FlattenHead forward.

    x:      [B, n_vars, d_model, patch_num]
    weight: [target_window, nf]  (PyTorch nn.Linear layout, nf = d_model*patch_num)
    bias:   [target_window]
    returns [B, n_vars, target_window]   (dtype of x)

    compute_dtype: dtype the matmul operands are fed to the MXU in (bf16 by
        default, f32 accumulation). Pass None for a full-precision matmul.
    allow_resident_weight: allow the single-K-step, VMEM-resident-weight path
        when it fits the VMEM budget.
    """
    B, n_vars, d_model, patch_num = x.shape
    nf = d_model * patch_num
    tw, nf_w = weight.shape
    assert nf_w == nf, (nf_w, nf)
    assert tk_target % 128 == 0

    out_dtype = x.dtype
    M = B * n_vars

    x_itemsize = jnp.dtype(x.dtype).itemsize
    w_dtype = compute_dtype if compute_dtype is not None else weight.dtype
    w_itemsize = jnp.dtype(w_dtype).itemsize
    o_itemsize = jnp.dtype(out_dtype).itemsize

    # ---- lane-dense minor dims ----------------------------------------------
    tw_p = _round_up(tw, 128)            # output / weight minor dim
    nf_128 = _round_up(nf, 128)          # contraction dim

    # ---- row tiling: minimal padding, sublane-aligned, >=2 parallel programs
    #      when M is large enough (v7x megacore) -------------------------------
    row_align = max(8, 32 // min(x_itemsize, o_itemsize))
    n_row_tiles = max(_cdiv(M, tm_target), 1)
    if M > 128 and n_row_tiles < 2:
        n_row_tiles = 2                  # use both v7x TensorCores
    tm = _round_up(_cdiv(M, n_row_tiles), row_align)
    n_row_tiles = _cdiv(M, tm)
    M_p = n_row_tiles * tm

    # ---- VMEM budget (per generation) ----------------------------------------
    vmem_cap = _vmem_capacity_bytes()
    budget = max(vmem_cap - 16 * _MIB, 24 * _MIB)
    bias_blk_bytes = 8 * tw_p * 4        # (1, tw_p) f32 pads to a sublane group

    def _resident_bytes(tm_):
        x_tile = tm_ * nf_128 * x_itemsize
        w_full = nf_128 * tw_p * w_itemsize
        o_tile = tm_ * tw_p * o_itemsize
        return 2 * (x_tile + w_full + o_tile + bias_blk_bytes)

    use_resident = allow_resident_weight and _resident_bytes(tm) <= budget

    if use_resident:
        # -------- single K step, weight DMA'd once and reused across row tiles
        nf_p = nf_128
        grid = (n_row_tiles,)
        kernel = functools.partial(_single_step_kernel, compute_dtype=compute_dtype)
        in_specs = [
            pl.BlockSpec((tm, nf_p), lambda i: (i, 0)),      # x row tiles
            pl.BlockSpec((nf_p, tw_p), lambda i: (0, 0)),    # resident weight
            pl.BlockSpec((1, tw_p), lambda i: (0, 0)),       # bias
        ]
        out_specs = pl.BlockSpec((tm, tw_p), lambda i: (i, 0))
        scratch_shapes = []
        dim_semantics = ("parallel",)
        needed = _resident_bytes(tm)
    else:
        # -------- K-tiled accumulator path; tk chosen so nf_p == nf_128 -------
        def _ktiled_bytes(tk_):
            x_tile = tm * tk_ * x_itemsize
            w_tile = tk_ * tw_p * w_itemsize
            o_tile = tm * tw_p * o_itemsize
            acc = tm * tw_p * 4
            return 2 * (x_tile + w_tile + o_tile + bias_blk_bytes) + acc

        nk = max(_cdiv(nf_128, tk_target), 1)
        tk = _round_up(_cdiv(nf_128, nk), 128)
        while tk > 128 and _ktiled_bytes(tk) > budget:
            nk += 1
            tk = _round_up(_cdiv(nf_128, nk), 128)
        nk = _cdiv(nf_128, tk)
        nf_p = nk * tk

        grid = (n_row_tiles, nk)
        kernel = functools.partial(_ktiled_kernel, compute_dtype=compute_dtype)
        in_specs = [
            pl.BlockSpec((tm, tk), lambda i, k: (i, k)),     # x row/K tiles
            pl.BlockSpec((tk, tw_p), lambda i, k: (k, 0)),   # weight K tiles
            pl.BlockSpec((1, tw_p), lambda i, k: (0, 0)),    # bias
        ]
        out_specs = pl.BlockSpec((tm, tw_p), lambda i, k: (i, 0))
        scratch_shapes = [pltpu.VMEM((tm, tw_p), jnp.float32)]
        dim_semantics = ("parallel", "arbitrary")
        needed = _ktiled_bytes(tk)

    vmem_limit = max(needed + needed // 4 + 4 * _MIB, 32 * _MIB)
    vmem_limit = min(vmem_limit, max(vmem_cap - 8 * _MIB, 32 * _MIB))
    vmem_limit = int(max(vmem_limit, needed + 2 * _MIB))

    # ---- operand prep (at most one HBM pass over each operand) ---------------
    # PyTorch Flatten(start_dim=-2) + fold batch dims; contiguous reshape (free).
    x2d = x.reshape(M, nf)
    if (M_p, nf_p) != (M, nf):
        # Single fused pad pass; NO dtype cast here (cast is done in-kernel).
        x2d = jnp.pad(x2d, ((0, M_p - M), (0, nf_p - nf)))

    # Fold the transpose + cast into the (already copying) weight pad.
    wT = weight.T                                      # [nf, tw]
    if compute_dtype is not None:
        wT = wT.astype(compute_dtype)
    if (nf_p, tw_p) != (nf, tw):
        wT = jnp.pad(wT, ((0, nf_p - nf), (0, tw_p - tw)))

    b2d = bias.astype(jnp.float32).reshape(1, tw)
    if tw_p != tw:
        b2d = jnp.pad(b2d, ((0, 0), (0, tw_p - tw)))

    out = pl.pallas_call(
        kernel,
        out_shape=jax.ShapeDtypeStruct((M_p, tw_p), out_dtype),
        grid_spec=pltpu.PrefetchScalarGridSpec(
            num_scalar_prefetch=0,
            grid=grid,
            in_specs=in_specs,
            out_specs=out_specs,
            scratch_shapes=scratch_shapes,
        ),
        compiler_params=pltpu.CompilerParams(
            dimension_semantics=dim_semantics,
            vmem_limit_bytes=vmem_limit,
        ),
    )(x2d, wT, b2d)

    # Strip padding, restore [B, n_vars, target_window].
    # TODO(synk): Dropout omitted — head_dropout=0 / eval-mode dropout is identity.
    return out[:M, :tw].reshape(B, n_vars, tw)


# --------------------------------------------------------------------------- #
# Reference + self-test
# --------------------------------------------------------------------------- #
def _reference(x, weight, bias, compute_dtype=None):
    B, n_vars, d_model, patch_num = x.shape
    xf = x.reshape(B, n_vars, d_model * patch_num)
    w = weight
    if compute_dtype is not None:
        xf = xf.astype(compute_dtype)
        w = w.astype(compute_dtype)
    y = jnp.einsum("bvn,tn->bvt", xf, w, preferred_element_type=jnp.float32)
    return (y + bias.astype(jnp.float32)).astype(x.dtype)


if __name__ == "__main__":
    key = jax.random.PRNGKey(0)
    k1, k2, k3 = jax.random.split(key, 3)

    # Small shapes: B=2, n_vars=4, d_model=8, patch_num=4 -> nf=32, target_window=16
    B, n_vars, d_model, patch_num = 2, 4, 8, 4
    nf = d_model * patch_num
    target_window = 16

    x = jax.random.normal(k1, (B, n_vars, d_model, patch_num), dtype=jnp.float32)
    bound = 1.0 / (nf ** 0.5)                    # nn.Linear-style init
    weight = jax.random.uniform(k2, (target_window, nf), jnp.float32, -bound, bound)
    bias = jax.random.uniform(k3, (target_window,), jnp.float32, -bound, bound)

    y_ref_f32 = _reference(x, weight, bias)

    # Resident-weight single-K-step path, bf16 operands on the MXU, f32 accum.
    y_bf16 = jax.block_until_ready(flatten_head(x, weight, bias))
    assert y_bf16.shape == (B, n_vars, target_window)
    assert jnp.allclose(y_bf16, _reference(x, weight, bias, jnp.bfloat16),
                        atol=1e-3, rtol=1e-3)
    assert jnp.allclose(y_bf16, y_ref_f32, atol=3e-2, rtol=3e-2)

    # Full-precision resident path matches the f32 reference tightly.
    y_f32 = jax.block_until_ready(flatten_head(x, weight, bias, compute_dtype=None))
    assert y_f32.shape == (B, n_vars, target_window)
    assert jnp.allclose(y_f32, y_ref_f32, atol=1e-5, rtol=1e-5)

    # Exercise the K-tiled accumulator path (multi K step + M/nf/tw padding).
    B2, nv2, dm2, pn2, tw2 = 3, 5, 16, 20, 96    # M=15, nf=320 -> nf_p=384, 3 K steps
    xb = jax.random.normal(k1, (B2, nv2, dm2, pn2), dtype=jnp.float32)
    b2 = 1.0 / ((dm2 * pn2) ** 0.5)
    wb = jax.random.uniform(k2, (tw2, dm2 * pn2), jnp.float32, -b2, b2)
    bb = jax.random.uniform(k3, (tw2,), jnp.float32, -b2, b2)
    y2 = jax.block_until_ready(
        flatten_head(xb, wb, bb, compute_dtype=None,
                     allow_resident_weight=False, tk_target=128))
    assert y2.shape == (B2, nv2, tw2)
    assert jnp.allclose(y2, _reference(xb, wb, bb), atol=1e-5, rtol=1e-5)

    print("KERNEL_OK")
</pallas_src>

<mosaic_0001>
module attributes {stable_mosaic.version = 11 : i64} {
  func.func @_single_step_kernel(%arg0: i32, %arg1: memref<8x128xf32, #tpu.memory_space<vmem>>, %arg2: memref<128x128xbf16, #tpu.memory_space<vmem>>, %arg3: memref<1x128xf32, #tpu.memory_space<vmem>>, %arg4: memref<8x128xf32, #tpu.memory_space<vmem>>) attributes {dimension_semantics = [#tpu.dimension_semantics<parallel>], iteration_bounds = array<i64: 1>, scalar_prefetch = 0 : i64, scratch_operands = 0 : i64, tpu.core_type = #tpu.core_type<tc>, window_params = [{transform_indices = @transform_0, window_bounds = array<i64: 8, 128>}, {pipeline_mode = #tpu.pipeline_mode<synchronous>, transform_indices = @transform_1, window_bounds = array<i64: 128, 128>}, {pipeline_mode = #tpu.pipeline_mode<synchronous>, transform_indices = @transform_2, window_bounds = array<i64: 1, 128>}, {transform_indices = @transform_3, window_bounds = array<i64: 8, 128>}]} {
    %c0 = arith.constant 0 : index
    %c0_0 = arith.constant 0 : index
    %0 = vector.load %arg1[%c0, %c0_0] : memref<8x128xf32, #tpu.memory_space<vmem>>, vector<8x128xf32>
    %1 = arith.truncf %0 : vector<8x128xf32> to vector<8x128xbf16>
    %c0_1 = arith.constant 0 : index
    %c0_2 = arith.constant 0 : index
    %2 = vector.load %arg2[%c0_1, %c0_2] : memref<128x128xbf16, #tpu.memory_space<vmem>>, vector<128x128xbf16>
    %cst = arith.constant dense<0.000000e+00> : vector<8x128xf32>
    %3 = tpu.matmul %1, %2, %cst {dimension_numbers = #tpu.dot_dimension_numbers<[1], [0], [0], [1], [0, 0, 1, 1], [], []>} : vector<8x128xbf16>, vector<128x128xbf16>, vector<8x128xf32> -> vector<8x128xf32>
    %c0_3 = arith.constant 0 : index
    %c0_4 = arith.constant 0 : index
    %4 = vector.load %arg3[%c0_3, %c0_4] : memref<1x128xf32, #tpu.memory_space<vmem>>, vector<1x128xf32>
    %5 = vector.broadcast %4 : vector<1x128xf32> to vector<8x128xf32>
    %6 = arith.addf %3, %5 : vector<8x128xf32>
    %c0_5 = arith.constant 0 : index
    %c0_6 = arith.constant 0 : index
    %7 = vector.load %arg4[%c0_5, %c0_6] : memref<8x128xf32, #tpu.memory_space<vmem>>, vector<8x128xf32>
    tpu.vector_store %arg4[%c0_5, %c0_6], %6 {strides = array<i32>} : memref<8x128xf32, #tpu.memory_space<vmem>>, vector<8x128xf32>,
    return
  }
  func.func @transform_0(%arg0: i32) -> (i32, i32) {
    %c0_i32 = arith.constant 0 : i32
    %c0_i32_0 = arith.constant 0 : i32
    return %arg0, %c0_i32 : i32, i32
  }
  func.func @transform_1(%arg0: i32) -> (i32, i32) {
    %c0_i32 = arith.constant 0 : i32
    %c0_i32_0 = arith.constant 0 : i32
    %c0_i32_1 = arith.constant 0 : i32
    return %c0_i32, %c0_i32_0 : i32, i32
  }
  func.func @transform_2(%arg0: i32) -> (i32, i32) {
    %c0_i32 = arith.constant 0 : i32
    %c0_i32_0 = arith.constant 0 : i32
    %c0_i32_1 = arith.constant 0 : i32
    return %c0_i32, %c0_i32_0 : i32, i32
  }
  func.func @transform_3(%arg0: i32) -> (i32, i32) {
    %c0_i32 = arith.constant 0 : i32
    %c0_i32_0 = arith.constant 0 : i32
    return %arg0, %c0_i32 : i32, i32
  }
}

</mosaic_0001>

<bundles_post_ra>
// kernel: tpu_custom_call.1
= control target key start
LH: loop header
LB: loop body
LE: loop exit
PB: predicated region body
PF: predicated region fallthrough
CT: control target
= control target key end

     0   :  { %8 = vsyncpa [#allocation3], 0  ;;  %s330_s0 = inlined_call_operand.hbm [shape: f32[8,128], index: 0, kind: input, shape index: {}]   ;;  %s331_s1 = inlined_call_operand.hbm [shape: bf16[128,128], index: 1, kind: input, shape index: {}]   ;;  %s332_s2 = inlined_call_operand.vmem [shape: f32[1,128], index: 2, kind: input, shape index: {}]   ;;  %s333_s3 = inlined_call_operand.hbm [shape: f32[8,128], index: 3, kind: output, shape index: {}]  }
   0x1   :  { %9 = vsyncpa [#allocation6], 0 }
   0x2   :  { %10 = vsyncpa [#allocation4], 0  ;;  %s291_s12 = smov [#allocation2]   ;;  %s292_s14 = smov [#allocation5]  }
   0x3   :  { %s17_s13 = sshll.u32 %s291_s12, 4  ;;  %s26_s15 = sshll.u32 %s292_s14, 4  ;;  %s18_s13 = int_to_ptr.vmem [resolvable:$true] %s17_s13  ;;  %s27_s15 = int_to_ptr.vmem [resolvable:$true] %s26_s15 }
   0x4   :  { %s233_s16 = scalar_lea.vmem %s18_s13, 128  ;;  %p238_p1 = scmp.lt.s32.totalorder %s18_s13, %s18_s13 }
   0x5   :  { %p234_p0 = scmp.ne.s32.totalorder %s18_s13, %s233_s16  ;;  %p239_p2 = scmp.lt.s32.totalorder %s233_s16, %s233_s16 }
   0x7   :  { %p240_p3 = por %p239_p2, %p238_p1 }
   0x9   :  { %p241_p4 = pnand %p240_p3, %p234_p0 }
   0xb   :  { %244 = shalt.err (!%p241_p4)
}
   0xc   :  { %20 = dma.hbm_to_vmem [thread:$0]  %s330_s0, 128, %s18_s13, [#allocation3]  }
   0xd   :  { %s253_s19 = scalar_lea.vmem %s27_s15, 1024  ;;  %p258_p6 = scmp.lt.s32.totalorder %s27_s15, %s27_s15 }
   0xe   :  { %p254_p5 = scmp.ne.s32.totalorder %s27_s15, %s253_s19  ;;  %p259_p7 = scmp.lt.s32.totalorder %s253_s19, %s253_s19 }
  0x10   :  { %p260_p8 = por %p259_p7, %p258_p6 }
  0x12   :  { %p261_p9 = pnand %p260_p8, %p254_p5 }
  0x14   :  { %264 = shalt.err (!%p261_p9)
}
  0x15   :  { %s293_s20 = smov 64   ;;  %s294_s21 = smov 4  }
  0x16   :  { %32 = dma.hbm_to_vmem [thread:$0]  %s331_s1, 1024, %s27_s15, [#allocation6], %s293_s20, %s293_s20, %s294_s21  }
  0x17   :  { %285 = dma.done.wait [#allocation3], 128  }
  0x18   :  { %286 = vsyncadd [#allocation3], 4294967168 }
  0x19   :  { %287 = dma.done.wait [#allocation6], 1024  }
  0x1a   :  { %288 = vsyncadd [#allocation6], 4294966272  ;;  %v295_v0 = vmov 0.0   ;;  %vm296_vm0 = vmmov 0   ;;  %v217_v1 = vld [vmem:[#allocation5 + $0x38] sm:$0xff]   ;;  %v218_v2 = vld [vmem:[#allocation5 + $0x30] sm:$0xff]  }
  0x1b   :  { %190 = vmatprep.subr.bf16.mxu0 %v295_v0  ;;  %206 = vmatprep.mubr.msk.bf16.mxu0 %vm296_vm0, %v295_v0  ;;  %v219_v3 = vld [vmem:[#allocation5 + $0x28] sm:$0xff]   ;;  %v220_v4 = vld [vmem:[#allocation5 + $0x20] sm:$0xff]   ;;  %v221_v5 = vld [vmem:[#allocation5 + $0x18] sm:$0xff]   ;;  %s297_s24 = smov [#allocation7]  }
  0x1c   :  { %191 = vmatpush3.bf16.msra.mxu0 %v217_v1  ;;  %v222_v6 = vld [vmem:[#allocation5 + $0x10] sm:$0xff]   ;;  %v223_v7 = vld [vmem:[#allocation5 + $0x8] sm:$0xff]   ;;  %v224_v8 = vld [vmem:[#allocation5] sm:$0xff]   ;;  %s162_s25 = sshll.u32 %s297_s24, 4  ;;  %s163_s25 = int_to_ptr.vmem [resolvable:$true] %s162_s25 }
  0x1d   :  { %192 = vmatprep.subr.bf16.mxu0 %v295_v0  ;;  %v42_v9 = vld [vmem:[#allocation2] sm:$0xff]  ;;  %s265_s26 = scalar_lea.vmem %s163_s25, 128  ;;  %p270_p11 = scmp.lt.s32.totalorder %s163_s25, %s163_s25 }
  0x1e   :  { %v43_v10 = vpack.c.bf16 %v42_v9, %v42_v9  ;;  %v172_v11 = vld [vmem:[%s332_s2] ss:$0 sm:$0xff]  ;;  %p266_p10 = scmp.ne.s32.totalorder %s163_s25, %s265_s26  ;;  %p271_p12 = scmp.lt.s32.totalorder %s265_s26, %s265_s26 }
  0x20   :  { %193 = vmatpush3.bf16.msra.mxu0 %v218_v2  ;;  %p272_p13 = por %p271_p12, %p270_p11 }
  0x21   :  { %194 = vmatprep.subr.bf16.mxu0 %v295_v0 }
  0x22   :  { %p273_p0 = pnand %p272_p13, %p266_p10 }
  0x24   :  { %195 = vmatpush3.bf16.msra.mxu0 %v219_v3 }
  0x25   :  { %196 = vmatprep.subr.bf16.mxu0 %v295_v0 }
  0x28   :  { %197 = vmatpush3.bf16.msra.mxu0 %v220_v4 }
  0x29   :  { %198 = vmatprep.subr.bf16.mxu0 %v295_v0 }
  0x2c   :  { %199 = vmatpush3.bf16.msra.mxu0 %v221_v5 }
  0x2d   :  { %200 = vmatprep.subr.bf16.mxu0 %v295_v0 }
  0x30   :  { %201 = vmatpush3.bf16.msra.mxu0 %v222_v6 }
  0x31   :  { %202 = vmatprep.subr.bf16.mxu0 %v295_v0 }
  0x34   :  { %203 = vmatpush3.bf16.msra.mxu0 %v223_v7 }
  0x35   :  { %204 = vmatprep.subr.bf16.mxu0 %v295_v0 }
  0x38   :  { %205 = vmatpush3.bf16.msra.mxu0 %v224_v8 }
  0x3b   :  { %207 = vmatmul.mubr.bf16.vlgmr.msra.gmra.mxu0 %v43_v10 }
  0xfb   :  { %v149_v12 = vpop.f32.mrf.mxu0 }
  0xfc   :  { %v150_v13 = vadd.f32 %v172_v11, %v149_v12 }
  0xfd   :  { %v208_v14 = vpop.f32.mrf.mxu0 }
  0xfe   :  { %155 = vst [vmem:[#allocation7] sm:$0xff] %v150_v13 }
  0xff   :  { %v152_v15 = vpop.f32.mrf.mxu0 }
 0x100   :  { %276 = shalt.err (!%p273_p0)
}
 0x101   :  { %165 = dma.vmem_to_hbm [thread:$0]  %s163_s25, 128, %s333_s3, [#allocation4]   ;;  %v209_v16 = vpop.f32.mrf.mxu0 }
 0x102   :  { %289 = dma.done.wait [#allocation4], 128  }
 0x103   :  { %290 = vsyncadd [#allocation4], 4294967168 }
 0x104   :  { %169 = vsyncpa [#allocation3], 1 }
 0x105   :  { %170 = vsyncpa [#allocation6], 1 }
 0x106   :  { %171 = vsyncpa [#allocation4], 1 }

</bundles_post_ra>
